<compile_context>
chip_gen: v7x
topology: tpu7x:2x2x1
jax: 0.10.0
libtpu: 0.0.40
codegen_flags: <defaults>
</compile_context>

<pallas_src>
import jax
import jax.numpy as jnp
from jax.experimental import pallas as pl
from jax.experimental.pallas import tpu as pltpu

LEAK = 0.1
EPS = 1e-5


def residual_block_kernel(x_ref, w1_ref, b1_ref, w2_ref, b2_ref, out_ref):
    # x_ref  : (1, H, W*Cin)    f32   lane-dense activations for one image
    # w1_ref : (W*Cin, W*C0)    bf16  block-diagonal 1x1 conv weight (BN1 folded)
    # b1_ref : (1, W*C0)        f32   folded BN1 bias, tiled over W
    # w2_ref : (3, W*C0, W*C1)  bf16  banded 3x3 weight per dh (BN2 + W-shift +
    #                                 SAME column padding folded into the band)
    # b2_ref : (1, W*C1)        f32   folded BN2 bias, tiled over W
    # out_ref: (1, H, W*C1)     f32
    H = x_ref.shape[1]
    WC1 = out_ref.shape[2]

    x = x_ref[0]                                              # (H, W*Cin) f32

    # ---- conv1 (1x1) + BN1 + LeakyReLU, fully lane-dense ----
    t = jnp.dot(x.astype(jnp.bfloat16), w1_ref[...],
                preferred_element_type=jnp.float32)           # (H, W*C0) f32
    t = t + b1_ref[0, :]
    t = jnp.maximum(t, LEAK * t)                              # LeakyReLU(0.1)
    t = t.astype(jnp.bfloat16)                                # MXU operand

    # ---- conv2 (3x3, SAME): W-shifts live in the banded weights, dh (row)
    #      shifts are sublane rolls (XLU) + boundary-row masking.  The sum is
    #      a plain register accumulator (no VMEM round trips). ----
    c_top = jnp.dot(t, w2_ref[0], preferred_element_type=jnp.float32)
    c_mid = jnp.dot(t, w2_ref[1], preferred_element_type=jnp.float32)
    c_bot = jnp.dot(t, w2_ref[2], preferred_element_type=jnp.float32)

    row = jax.lax.broadcasted_iota(jnp.int32, (H, WC1), 0)
    y = c_mid
    # output row h gets the dh=0 tap from t[h-1]  (row 0 sees zero padding)
    y = y + jnp.where(row > 0, pltpu.roll(c_top, 1, axis=0), 0.0)
    # output row h gets the dh=2 tap from t[h+1]  (row H-1 sees zero padding)
    y = y + jnp.where(row < H - 1, pltpu.roll(c_bot, H - 1, axis=0), 0.0)

    y = y + b2_ref[0, :]
    y = jnp.maximum(y, LEAK * y)                              # LeakyReLU(0.1)

    # ---- residual add (Cin == C1, identical lane-dense layout) and store ----
    out_ref[...] = (y + x).reshape(1, H, WC1)


def _fold_bn(gamma, beta, mean, var):
    scale = gamma / jnp.sqrt(var + EPS)
    bias = beta - mean * scale
    return scale, bias


def residual_block(x_nchw, w1_oihw, bn1, w2_oihw, bn2):
    """x_nchw: (N, Cin, H, W) f32.  Conv weights in PyTorch (O, I, kh, kw)
    layout, bn* = (gamma, beta, running_mean, running_var).  Returns NCHW."""
    C0 = w1_oihw.shape[0]
    C1 = w2_oihw.shape[0]

    x = jnp.transpose(x_nchw, (0, 2, 3, 1)).astype(jnp.float32)   # NCHW -> NHWC
    N, H, W, Cin = x.shape
    assert C1 == Cin, "residual add requires channels[1] == in_channels"

    # ---- fold eval-mode BN into the conv weights (scale) and bias vectors ----
    s1, b1 = _fold_bn(*bn1)
    s2, b2 = _fold_bn(*bn2)
    w1_mat = jnp.transpose(w1_oihw[:, :, 0, 0], (1, 0)) * s1[None, :]   # (Cin, C0)
    w2_hwio = jnp.transpose(w2_oihw, (2, 3, 1, 0)) * s2                 # (3,3,C0,C1)

    # ---- lane-dense weight packing (built once, tiny) ----
    # conv1 as block-diagonal (W*Cin, W*C0): lane w*Cin+ci -> lane w*C0+co
    w1big = jnp.einsum('wv,ic->wivc', jnp.eye(W, dtype=jnp.float32), w1_mat
                       ).reshape(W * Cin, W * C0).astype(jnp.bfloat16)
    # conv2 per-dh banded (W*C0, W*C1): input lane (w+dw-1)*C0+ci -> lane
    # w*C1+co; out-of-range columns are simply absent => SAME column padding.
    w2big = jnp.stack([
        sum(jnp.einsum('vw,ic->viwc',
                       jnp.eye(W, k=1 - dw, dtype=jnp.float32),
                       w2_hwio[dh, dw]) for dw in range(3)
            ).reshape(W * C0, W * C1)
        for dh in range(3)]).astype(jnp.bfloat16)                       # (3, WC0, WC1)
    b1row = jnp.tile(b1, W).reshape(1, W * C0).astype(jnp.float32)
    b2row = jnp.tile(b2, W).reshape(1, W * C1).astype(jnp.float32)

    # ---- lane-dense activation layout (N, H, W*C); grid over batch only ----
    x_flat = x.reshape(N, H, W * Cin)

    # Per-step VMEM working set (double-buffered I/O + weights) must fit the
    # smallest scoped budget (v7x: 32 MiB default of 64 MiB physical).
    per_step_bytes = (2 * H * W * Cin * 4 + 2 * H * W * C1 * 4
                      + (W * Cin) * (W * C0) * 2 + 3 * (W * C0) * (W * C1) * 2
                      + (W * C0 + W * C1) * 4)
    assert per_step_bytes < 24 * 1024 * 1024, (
        "image too large for batch-only grid; needs row-tiled halo DMA")

    out_flat = pl.pallas_call(
        residual_block_kernel,
        out_shape=jax.ShapeDtypeStruct((N, H, W * C1), jnp.float32),
        grid_spec=pltpu.PrefetchScalarGridSpec(
            num_scalar_prefetch=0,
            grid=(N,),
            in_specs=[
                pl.BlockSpec((1, H, W * Cin), lambda n: (n, 0, 0)),
                pl.BlockSpec((W * Cin, W * C0), lambda n: (0, 0)),
                pl.BlockSpec((1, W * C0), lambda n: (0, 0)),
                pl.BlockSpec((3, W * C0, W * C1), lambda n: (0, 0, 0)),
                pl.BlockSpec((1, W * C1), lambda n: (0, 0)),
            ],
            out_specs=pl.BlockSpec((1, H, W * C1), lambda n: (n, 0, 0)),
        ),
        compiler_params=pltpu.CompilerParams(
            dimension_semantics=("parallel",)),
    )(x_flat, w1big, b1row, w2big, b2row)

    out = out_flat.reshape(N, H, W, C1)
    return jnp.transpose(out, (0, 3, 1, 2))                        # NHWC -> NCHW


def reference(x_nchw, w1_oihw, bn1, w2_oihw, bn2):
    """Pure-JAX f32 reference (eval-mode BN) for correctness checking."""
    x = jnp.transpose(x_nchw, (0, 2, 3, 1))
    w1 = jnp.transpose(w1_oihw, (2, 3, 1, 0))
    w2 = jnp.transpose(w2_oihw, (2, 3, 1, 0))

    def bn(t, p):
        g, b, m, v = p
        return (t - m) * (g / jnp.sqrt(v + EPS)) + b

    t = jax.lax.conv_general_dilated(
        x, w1, (1, 1), 'SAME', dimension_numbers=('NHWC', 'HWIO', 'NHWC'))
    t = bn(t, bn1)
    t = jnp.where(t > 0, t, LEAK * t)
    t = jax.lax.conv_general_dilated(
        t, w2, (1, 1), 'SAME', dimension_numbers=('NHWC', 'HWIO', 'NHWC'))
    t = bn(t, bn2)
    t = jnp.where(t > 0, t, LEAK * t)
    y = t + x
    return jnp.transpose(y, (0, 3, 1, 2))


if __name__ == "__main__":
    key = jax.random.PRNGKey(0)
    ks = jax.random.split(key, 5)

    # ResidualBlock(in_channels=8, channels=[4, 8]), small input
    N, Cin, H, W = 2, 8, 16, 16
    C0, C1 = 4, 8

    x = jax.random.normal(ks[0], (N, Cin, H, W), jnp.float32)
    w1_oihw = 0.1 * jax.random.normal(ks[1], (C0, Cin, 1, 1), jnp.float32)
    w2_oihw = 0.1 * jax.random.normal(ks[2], (C1, C0, 3, 3), jnp.float32)

    def bn_params(k, C):
        ka, kb, kc, kd = jax.random.split(k, 4)
        gamma = 1.0 + 0.1 * jax.random.normal(ka, (C,), jnp.float32)
        beta = 0.1 * jax.random.normal(kb, (C,), jnp.float32)
        mean = 0.1 * jax.random.normal(kc, (C,), jnp.float32)
        var = jnp.abs(1.0 + 0.1 * jax.random.normal(kd, (C,), jnp.float32))
        return gamma, beta, mean, var

    bn1 = bn_params(ks[3], C0)
    bn2 = bn_params(ks[4], C1)

    out = residual_block(x, w1_oihw, bn1, w2_oihw, bn2)
    out = jax.block_until_ready(out)

    ref = reference(x, w1_oihw, bn1, w2_oihw, bn2)
    max_err = float(jnp.max(jnp.abs(out - ref)))
    # bf16 matmul operands with f32 accumulation -> a few 1e-3 absolute error.
    assert jnp.allclose(out, ref, atol=2e-2, rtol=2e-2), max_err

    print("KERNEL_OK")
</pallas_src>

<mosaic_0001>
module attributes {stable_mosaic.version = 11 : i64} {
  func.func @residual_block_kernel(%arg0: i32, %arg1: memref<1x16x128xf32, #tpu.memory_space<vmem>>, %arg2: memref<128x64xbf16, #tpu.memory_space<vmem>>, %arg3: memref<1x64xf32, #tpu.memory_space<vmem>>, %arg4: memref<3x64x128xbf16, #tpu.memory_space<vmem>>, %arg5: memref<1x128xf32, #tpu.memory_space<vmem>>, %arg6: memref<1x16x128xf32, #tpu.memory_space<vmem>>) attributes {dimension_semantics = [#tpu.dimension_semantics<parallel>], iteration_bounds = array<i64: 2>, scalar_prefetch = 0 : i64, scratch_operands = 0 : i64, tpu.core_type = #tpu.core_type<tc>, window_params = [{transform_indices = @transform_0, window_bounds = array<i64: 1, 16, 128>}, {pipeline_mode = #tpu.pipeline_mode<synchronous>, transform_indices = @transform_1, window_bounds = array<i64: 128, 64>}, {pipeline_mode = #tpu.pipeline_mode<synchronous>, transform_indices = @transform_2, window_bounds = array<i64: 1, 64>}, {pipeline_mode = #tpu.pipeline_mode<synchronous>, transform_indices = @transform_3, window_bounds = array<i64: 3, 64, 128>}, {pipeline_mode = #tpu.pipeline_mode<synchronous>, transform_indices = @transform_4, window_bounds = array<i64: 1, 128>}, {transform_indices = @transform_5, window_bounds = array<i64: 1, 16, 128>}]} {
    %c0 = arith.constant 0 : index
    %c0_0 = arith.constant 0 : index
    %c0_1 = arith.constant 0 : index
    %0 = vector.load %arg1[%c0, %c0_0, %c0_1] : memref<1x16x128xf32, #tpu.memory_space<vmem>>, vector<1x16x128xf32>
    %1 = vector.shape_cast %0 : vector<1x16x128xf32> to vector<16x128xf32>
    %2 = arith.truncf %1 : vector<16x128xf32> to vector<16x128xbf16>
    %c0_2 = arith.constant 0 : index
    %c0_3 = arith.constant 0 : index
    %3 = vector.load %arg2[%c0_2, %c0_3] : memref<128x64xbf16, #tpu.memory_space<vmem>>, vector<128x64xbf16>
    %cst = arith.constant dense<0.000000e+00> : vector<16x64xf32>
    %4 = tpu.matmul %2, %3, %cst {dimension_numbers = #tpu.dot_dimension_numbers<[1], [0], [0], [1], [0, 0, 1, 1], [], []>} : vector<16x128xbf16>, vector<128x64xbf16>, vector<16x64xf32> -> vector<16x64xf32>
    %c0_4 = arith.constant 0 : index
    %c0_5 = arith.constant 0 : index
    %5 = vector.load %arg3[%c0_4, %c0_5] : memref<1x64xf32, #tpu.memory_space<vmem>>, vector<1x64xf32>
    %6 = vector.shape_cast %5 : vector<1x64xf32> to vector<64xf32>
    %7 = vector.shape_cast %6 : vector<64xf32> to vector<1x64xf32>
    %8 = vector.broadcast %7 : vector<1x64xf32> to vector<16x64xf32>
    %9 = arith.addf %4, %8 : vector<16x64xf32>
    %cst_6 = arith.constant 1.000000e-01 : f32
    %10 = vector.broadcast %cst_6 : f32 to vector<16x64xf32>
    %11 = arith.mulf %10, %9 : vector<16x64xf32>
    %12 = arith.maximumf %9, %11 : vector<16x64xf32>
    %13 = arith.truncf %12 : vector<16x64xf32> to vector<16x64xbf16>
    %c0_7 = arith.constant 0 : index
    %c0_8 = arith.constant 0 : index
    %c0_9 = arith.constant 0 : index
    %14 = vector.load %arg4[%c0_7, %c0_8, %c0_9] : memref<3x64x128xbf16, #tpu.memory_space<vmem>>, vector<1x64x128xbf16>
    %15 = vector.shape_cast %14 : vector<1x64x128xbf16> to vector<64x128xbf16>
    %cst_10 = arith.constant dense<0.000000e+00> : vector<16x128xf32>
    %16 = tpu.matmul %13, %15, %cst_10 {dimension_numbers = #tpu.dot_dimension_numbers<[1], [0], [0], [1], [0, 0, 1, 1], [], []>} : vector<16x64xbf16>, vector<64x128xbf16>, vector<16x128xf32> -> vector<16x128xf32>
    %c1 = arith.constant 1 : index
    %c0_11 = arith.constant 0 : index
    %c0_12 = arith.constant 0 : index
    %17 = vector.load %arg4[%c1, %c0_11, %c0_12] : memref<3x64x128xbf16, #tpu.memory_space<vmem>>, vector<1x64x128xbf16>
    %18 = vector.shape_cast %17 : vector<1x64x128xbf16> to vector<64x128xbf16>
    %cst_13 = arith.constant dense<0.000000e+00> : vector<16x128xf32>
    %19 = tpu.matmul %13, %18, %cst_13 {dimension_numbers = #tpu.dot_dimension_numbers<[1], [0], [0], [1], [0, 0, 1, 1], [], []>} : vector<16x64xbf16>, vector<64x128xbf16>, vector<16x128xf32> -> vector<16x128xf32>
    %c2 = arith.constant 2 : index
    %c0_14 = arith.constant 0 : index
    %c0_15 = arith.constant 0 : index
    %20 = vector.load %arg4[%c2, %c0_14, %c0_15] : memref<3x64x128xbf16, #tpu.memory_space<vmem>>, vector<1x64x128xbf16>
    %21 = vector.shape_cast %20 : vector<1x64x128xbf16> to vector<64x128xbf16>
    %cst_16 = arith.constant dense<0.000000e+00> : vector<16x128xf32>
    %22 = tpu.matmul %13, %21, %cst_16 {dimension_numbers = #tpu.dot_dimension_numbers<[1], [0], [0], [1], [0, 0, 1, 1], [], []>} : vector<16x64xbf16>, vector<64x128xbf16>, vector<16x128xf32> -> vector<16x128xf32>
    %23 = tpu.iota {dimensions = array<i32: 0>} : vector<16x128xi32>
    %c0_i32 = arith.constant 0 : i32
    %24 = vector.broadcast %c0_i32 : i32 to vector<16x128xi32>
    %25 = arith.cmpi sgt, %23, %24 : vector<16x128xi32>
    %c1_i32 = arith.constant 1 : i32
    %26 = tpu.dynamic_rotate %16 by %c1_i32 dim 0 : vector<16x128xf32>, i32 -> vector<16x128xf32>
    %cst_17 = arith.constant 0.000000e+00 : f32
    %27 = vector.broadcast %cst_17 : f32 to vector<16x128xf32>
    %28 = arith.select %25, %26, %27 : vector<16x128xi1>, vector<16x128xf32>
    %29 = arith.addf %19, %28 : vector<16x128xf32>
    %c15_i32 = arith.constant 15 : i32
    %30 = vector.broadcast %c15_i32 : i32 to vector<16x128xi32>
    %31 = arith.cmpi slt, %23, %30 : vector<16x128xi32>
    %c15_i32_18 = arith.constant 15 : i32
    %32 = tpu.dynamic_rotate %22 by %c15_i32_18 dim 0 : vector<16x128xf32>, i32 -> vector<16x128xf32>
    %cst_19 = arith.constant 0.000000e+00 : f32
    %33 = vector.broadcast %cst_19 : f32 to vector<16x128xf32>
    %34 = arith.select %31, %32, %33 : vector<16x128xi1>, vector<16x128xf32>
    %35 = arith.addf %29, %34 : vector<16x128xf32>
    %c0_20 = arith.constant 0 : index
    %c0_21 = arith.constant 0 : index
    %36 = vector.load %arg5[%c0_20, %c0_21] : memref<1x128xf32, #tpu.memory_space<vmem>>, vector<1x128xf32>
    %37 = vector.shape_cast %36 : vector<1x128xf32> to vector<128xf32>
    %38 = vector.shape_cast %37 : vector<128xf32> to vector<1x128xf32>
    %39 = vector.broadcast %38 : vector<1x128xf32> to vector<16x128xf32>
    %40 = arith.addf %35, %39 : vector<16x128xf32>
    %cst_22 = arith.constant 1.000000e-01 : f32
    %41 = vector.broadcast %cst_22 : f32 to vector<16x128xf32>
    %42 = arith.mulf %41, %40 : vector<16x128xf32>
    %43 = arith.maximumf %40, %42 : vector<16x128xf32>
    %44 = arith.addf %43, %1 : vector<16x128xf32>
    %45 = vector.shape_cast %44 : vector<16x128xf32> to vector<1x16x128xf32>
    %c0_23 = arith.constant 0 : index
    %c0_24 = arith.constant 0 : index
    %c0_25 = arith.constant 0 : index
    %46 = vector.load %arg6[%c0_23, %c0_24, %c0_25] : memref<1x16x128xf32, #tpu.memory_space<vmem>>, vector<1x16x128xf32>
    tpu.vector_store %arg6[%c0_23, %c0_24, %c0_25], %45 {strides = array<i32>} : memref<1x16x128xf32, #tpu.memory_space<vmem>>, vector<1x16x128xf32>,
    return
  }
  func.func @transform_0(%arg0: i32) -> (i32, i32, i32) {
    %c0_i32 = arith.constant 0 : i32
    %c0_i32_0 = arith.constant 0 : i32
    %c0_i32_1 = arith.constant 0 : i32
    return %arg0, %c0_i32, %c0_i32_0 : i32, i32, i32
  }
  func.func @transform_1(%arg0: i32) -> (i32, i32) {
    %c0_i32 = arith.constant 0 : i32
    %c0_i32_0 = arith.constant 0 : i32
    %c0_i32_1 = arith.constant 0 : i32
    return %c0_i32, %c0_i32_0 : i32, i32
  }
  func.func @transform_2(%arg0: i32) -> (i32, i32) {
    %c0_i32 = arith.constant 0 : i32
    %c0_i32_0 = arith.constant 0 : i32
    %c0_i32_1 = arith.constant 0 : i32
    return %c0_i32, %c0_i32_0 : i32, i32
  }
  func.func @transform_3(%arg0: i32) -> (i32, i32, i32) {
    %c0_i32 = arith.constant 0 : i32
    %c0_i32_0 = arith.constant 0 : i32
    %c0_i32_1 = arith.constant 0 : i32
    %c0_i32_2 = arith.constant 0 : i32
    return %c0_i32, %c0_i32_0, %c0_i32_1 : i32, i32, i32
  }
  func.func @transform_4(%arg0: i32) -> (i32, i32) {
    %c0_i32 = arith.constant 0 : i32
    %c0_i32_0 = arith.constant 0 : i32
    %c0_i32_1 = arith.constant 0 : i32
    return %c0_i32, %c0_i32_0 : i32, i32
  }
  func.func @transform_5(%arg0: i32) -> (i32, i32, i32) {
    %c0_i32 = arith.constant 0 : i32
    %c0_i32_0 = arith.constant 0 : i32
    %c0_i32_1 = arith.constant 0 : i32
    return %arg0, %c0_i32, %c0_i32_0 : i32, i32, i32
  }
}

</mosaic_0001>

<bundles_post_ra>
// kernel: tpu_custom_call.1
= control target key start
LH: loop header
LB: loop body
LE: loop exit
PB: predicated region body
PF: predicated region fallthrough
CT: control target
= control target key end

     0   :  { %10 = vsyncpa [#allocation3], 0  ;;  %s1336_s0 = inlined_call_operand.hbm [shape: f32[2,16,128], index: 0, kind: input, shape index: {}]   ;;  %s1337_s1 = inlined_call_operand.vmem [shape: bf16[128,64], index: 1, kind: input, shape index: {}]   ;;  %s1338_s2 = inlined_call_operand.vmem [shape: f32[1,64], index: 2, kind: input, shape index: {}]   ;;  %s1339_s3 = inlined_call_operand.vmem [shape: bf16[3,64,128], index: 3, kind: input, shape index: {}]   ;;  %s1340_s4 = inlined_call_operand.vmem [shape: f32[1,128], index: 4, kind: input, shape index: {}]   ;;  %s1341_s5 = inlined_call_operand.hbm [shape: f32[2,16,128], index: 5, kind: output, shape index: {}]  }
   0x1   :  { %12 = vsyncpa [#allocation3 + $0x1], 0 }
   0x2   :  { %13 = vsyncpa [#allocation4], 0 }
   0x3   :  { %15 = vsyncpa [#allocation4 + $0x1], 0  ;;  %s1061_s18 = smov 0   ;;  %s1063_s19 = smov 0  }
   0x4   :  { %s1065_s20 = smov 0   ;;  %s1067_s21 = smov 0  }
   0x5 LB: > { %s1082_s22 = sadd.s32 4294967295, %s1021_s21   ;;  %s716_s23 = sadd.s32 4294967294, %s1021_s21   ;;  %s1021_s21 = sphi %s1067_s21, %s1354_s21   ;;  %s1017_s20 = sphi %s1065_s20, %s1353_s20   ;;  %s1013_s19 = sphi %s1063_s19, %s1352_s19   ;;  %s1009_s18 = sphi %s1061_s18, %s1351_s18  }
   0x6   : > { %s1086_s24 = sadd.s32 1, %s1021_s21   ;;  %s28_s25 = sadd.s32 1, %s1017_s20 }
   0x7   : > { %s25_s26 = ssub.s32 %s1021_s21, %s1086_s24  ;;  %p35_p0 = scmp.ne.s32.totalorder %s1017_s20, %s1013_s19 }
   0x8   : > { %p26_p1 = scmp.eq.s32.totalorder %s25_s26, 0  ;;  %p36_p2 = scmp.eq.s32.totalorder %s1021_s21, 0 }
   0x9   : > { %p41_p3 = scmp.ne.s32.totalorder %s1013_s19, %s1009_s18  ;;  %p42_p4 = scmp.eq.s32.totalorder %s1082_s22, 0 }
   0xa   : > { %s1098_s27 = scalar_select %p26_p1, %s1017_s20, %s28_s25  }
   0xb   : > { %p1100_p5 = por %p36_p2, %p35_p0  ;;  %p1104_p6 = por %p42_p4, %p41_p3 }
   0xc   : > { %p149_p7 = scmp.eq.s32.totalorder %s1082_s22, 1  ;;  %p155_p8 = scmp.eq.s32.totalorder %s716_s23, 1 }
   0xd   : > { %p865_p10 = scmp.lt.s32.totalorder %s1021_s21, 2  ;;  %s187_s7 = sand.u32 1, %s1017_s20  }
   0xe   : > { %p1111_p11 = por %p149_p7, %p35_p0  ;;  %p1115_p12 = por %p155_p8, %p41_p3 }
   0xf   : > { %s771_s8 = sshll.u32 %s1021_s21, 8  ;;  %s719_s9 = sshll.u32 %s187_s7, 4 }
  0x10   : > { %s1345_s30 = scalar_select %p1111_p11, 1, 0 }
  0x11   : > { %s1346_s6 = scalar_select %p1115_p12, 1, 0 }
  0x12   : > { %s1124_s12 = scalar_lea.hbm %s1336_s0, %s771_s8  ;;  %s191_s13 = scalar_lea.vmem [#allocation2], %s719_s9 }
  0x13   : > { %s198_s14 = sshll.u32 %s191_s13, 4  ;;  %p1128_p13 = pnand %p865_p10, %p1100_p5  ;;  %s1132_s14 = int_to_ptr.vmem [resolvable:$true] %s198_s14 }
  0x14   : > { %s1134_s16 = scalar_lea.sflag [#allocation3], %s187_s7  ;;  %s925_s17 = scalar_lea.hbm %s1124_s12, 256 }
  0x15   : > { %p926_p0 = scmp.ne.s32.totalorder %s1124_s12, %s925_s17  ;;  %p927_p1 = pneg %p1128_p13 }
  0x16   : > { %s930_s26 = scalar_lea.hbm %s1336_s0, 512  ;;  %p931_p4 = scmp.lt.u32.totalorder %s1124_s12, %s1336_s0 }
  0x17   : > { %p928_p2 = pnand %p927_p1, %p926_p0  ;;  %p932_p5 = scmp.lt.u32.totalorder %s930_s26, %s925_s17 }
  0x18   : > { %p934_p8 = scmp.lt.u32.totalorder %s925_s17, %s1124_s12 }
  0x19   : > { %p929_p3 = pneg %p928_p2  ;;  %p933_p7 = por %p932_p5, %p931_p4 }
  0x1b   : > { %p935_p10 = por %p934_p8, %p933_p7 }
  0x1d   : > { %p936_p9 = pnand %p935_p10, %p929_p3 }
  0x1f   : > { %939 = shalt.err (!%p936_p9)
}
  0x20   : > { %s940_s7 = scalar_lea.vmem %s1132_s14, 256  ;;  %s1023_s9 = smov [#allocation2]  }
  0x21   : > { %p941_p0 = scmp.ne.s32.totalorder %s1132_s14, %s940_s7  ;;  %s945_s10 = sshll.u32 %s1023_s9, 4  ;;  %s946_s10 = int_to_ptr.vmem [resolvable:$false] %s945_s10 }
  0x22   : > { %s947_s11 = scalar_lea.vmem %s946_s10, 512  ;;  %p948_p11 = scmp.lt.s32.totalorder %s1132_s14, %s946_s10 }
  0x23   : > { %p943_p2 = pnand %p941_p0, %p927_p1  ;;  %p949_p4 = scmp.lt.s32.totalorder %s947_s11, %s940_s7 }
  0x25   : > { %p944_p12 = pneg %p943_p2  ;;  %p950_p5 = por %p949_p4, %p948_p11 }
  0x27   : > { %p951_p7 = pnand %p950_p5, %p944_p12 }
  0x29   : > { %954 = shalt.err (!%p951_p7)
}
  0x2a   : > { %s1024_s13 = smov 128   ;;  %s1025_s17 = smov 8  }
  0x2b   : > { %860 = dma.hbm_to_vmem [thread:$0]  (!%p1128_p13), %s1124_s12, 256, %s1132_s14, %s1134_s16, %s1024_s13, %s1024_s13, %s1025_s17  }
  0x2c   : > { %p722_p9 = scmp.ge.s32.totalorder %s1021_s21, 1  ;;  %p206_p1 = scmp.lt.s32.totalorder %s1021_s21, 3 }
  0x2e   : > { %p207_p3 = pnand %p722_p9, %p206_p1 }
  0x2f   : > { %s1165_s23 = sand.u32 (!%p207_p3), 1, %s1013_s19  }
  0x30   : > { %210 = sbr.rel (%p207_p3) target bundleno = 571 (0x23b), region = 40  ;;  %s723_s25 = sshll.u32 (!%p207_p3), %s1165_s23, 4 }
  0x31   : > { %s213_s26 = scalar_lea.sflag (!%p207_p3), [#allocation3], %s1165_s23  ;;  %s1171_s28 = scalar_lea.vmem (!%p207_p3), [#allocation2], %s723_s25 }
  0x37   : > { %1000 = dma.done.wait (%p1104_p6), %s213_s26, 256  }
  0x38   : > { %1002 = vsyncadd (%p1104_p6), %s213_s26, 4294967040  ;;  %v1026_v0 = vmov 0.0   ;;  %vm1027_vm0 = vmmov 0   ;;  %v905_v1 = vld [vmem:[%s1337_s1] sm:$0xff]   ;;  %v906_v2 = vld [vmem:[%s1337_s1 + $0x8] sm:$0xff]   ;;  %vm396_vm1 = vcmask 523264   ;;  %v524_v36 = vlaneseq }
  0x39   : > { %797 = vmatprep.subr.bf16.mxu0 %v1026_v0  ;;  %813 = vmatprep.mubr.msk.bf16.mxu0 %vm1027_vm0, %v1026_v0  ;;  %v907_v3 = vld [vmem:[%s1337_s1 + $0x10] sm:$0xff]   ;;  %v913_v4 = vld [vmem:[%s1339_s3] sm:$0xff]   ;;  %v908_v5 = vld [vmem:[%s1337_s1 + $0x18] sm:$0xff]   ;;  %s772_s29 = sshll.u32 %s1082_s22, 8  ;;  %s242_s16 = scalar_lea.vmem [#allocation5], %s723_s25 }
  0x3a   : > { %817 = vmatprep.subr.bf16.mxu1 %v1026_v0  ;;  %825 = vmatprep.mubr.msk.bf16.mxu1 %vm1027_vm0, %v1026_v0  ;;  %v915_v6 = vld [vmem:[%s1339_s3 + $0x8] sm:$0xff]   ;;  %v909_v7 = vld [vmem:[%s1337_s1 + $0x20] sm:$0xff]   ;;  %v911_v9 = vld [vmem:[%s1337_s1 + $0x30] sm:$0xff]   ;;  %v525_v37 = vshrl.u32 %v524_v36, 7  ;;  %s643_s8 = sshll.u32 %s242_s16, 4  ;;  %s1289_s10 = scalar_lea.hbm %s1341_s5, %s772_s29  ;;  %s1291_s8 = int_to_ptr.vmem [resolvable:$true] %s643_s8 }
  0x3b   : > { %798 = vmatpush3.bf16.msra.mxu0 %v905_v1  ;;  %818 = vmatpush3.bf16.msra.mxu1 %v913_v4  ;;  %v910_v8 = vld [vmem:[%s1337_s1 + $0x28] sm:$0xff]   ;;  %v912_v10 = vld [vmem:[%s1337_s1 + $0x38] sm:$0xff]   ;;  %v1222_v11 = vld [vmem:[%s1171_s28] sm:$0xff]  ;;  %s630_s22 = scalar_lea.sflag [#allocation4], %s1165_s23  ;;  %s955_s25 = scalar_lea.vmem %s1291_s8, 256 }
  0x3c   : > { %799 = vmatprep.subr.bf16.mxu0 %v1026_v0  ;;  %819 = vmatprep.subr.bf16.mxu1 %v1026_v0  ;;  %v1225_v12 = vld [vmem:[%s1171_s28 + $0x8] sm:$0xff]  ;;  %v914_v14 = vld [vmem:[%s1339_s3 + $0x20] sm:$0xff]   ;;  %v917_v16 = vld [vmem:[%s1339_s3 + $0x10] sm:$0xff]   ;;  %vm531_vm2 = vcmp.lt.s32.totalorder %v525_v37, 1  ;;  %vm527_vm3 = vcmp.gt.s32.totalorder %v525_v37, 0  ;;  %v526_v53 = vadd.s32 8, %v525_v37  ;;  %p956_p6 = scmp.ne.s32.totalorder %s1291_s8, %s955_s25 }
  0x3d   : > { %v246_v13 = vpack.c.bf16 %v1225_v12, %v1222_v11  ;;  %v916_v15 = vld [vmem:[%s1339_s3 + $0x28] sm:$0xff]   ;;  %v918_v17 = vld [vmem:[%s1339_s3 + $0x30] sm:$0xff]   ;;  %v919_v18 = vld [vmem:[%s1339_s3 + $0x18] sm:$0xff]   ;;  %vm605_vm4 = vcmp.lt.s32.totalorder %v525_v37, 7  ;;  %p1348_p11 = scmp.ne.s32.totalorder %s1345_s30, 0  ;;  %s1028_s28 = smov [#allocation5]  }
  0x3e   : > { %v920_v19 = vld [vmem:[%s1339_s3 + $0x38] sm:$0xff]   ;;  %v725_v20 = vld [vmem:[%s1338_s2] ss:$0 sm:$0xff]  ;;  %v922_v33 = vld [vmem:[%s1339_s3 + $0x48] sm:$0xff]   ;;  %vm602_vm5 = vcmp.lt.s32.totalorder %v526_v53, 15  ;;  %s959_s11 = sshll.u32 %s1028_s28, 4  ;;  %s960_s11 = int_to_ptr.vmem [resolvable:$false] %s959_s11 }
  0x3f   : > { %800 = vmatpush3.bf16.msra.mxu0 %v906_v2  ;;  %820 = vmatpush3.bf16.msra.mxu1 %v915_v6  ;;  %v921_v31 = vld [vmem:[%s1339_s3 + $0x40] sm:$0xff]   ;;  %v923_v34 = vld [vmem:[%s1339_s3 + $0x50] sm:$0xff]   ;;  %v924_v35 = vld [vmem:[%s1339_s3 + $0x58] sm:$0xff]   ;;  %p957_p12 = pnand %p956_p6, %p1348_p11  ;;  %s961_s13 = scalar_lea.vmem %s960_s11, 512 }
  0x40   : > { %801 = vmatprep.subr.bf16.mxu0 %v1026_v0  ;;  %821 = vmatprep.subr.bf16.mxu1 %v1026_v0  ;;  %v765_v62 = vld [vmem:[%s1340_s4] ss:$0 sm:$0xff]  ;;  %p962_p8 = scmp.lt.s32.totalorder %s1291_s8, %s960_s11  ;;  %p963_p10 = scmp.lt.s32.totalorder %s961_s13, %s955_s25 }
  0x41   : > { %p958_p13 = pneg %p957_p12 }
  0x42   : > { %p964_p0 = por %p963_p10, %p962_p8 }
  0x43   : > { %802 = vmatpush3.bf16.msra.mxu0 %v907_v3  ;;  %822 = vmatpush3.bf16.msra.mxu1 %v917_v16 }
  0x44   : > { %803 = vmatprep.subr.bf16.mxu0 %v1026_v0  ;;  %823 = vmatprep.subr.bf16.mxu1 %v1026_v0  ;;  %p965_p2 = pnand %p964_p0, %p958_p13 }
  0x47   : > { %804 = vmatpush3.bf16.msra.mxu0 %v908_v5  ;;  %824 = vmatpush3.bf16.msra.mxu1 %v919_v18 }
  0x48   : > { %805 = vmatprep.subr.bf16.mxu0 %v1026_v0  ;;  %829 = vmatprep.subr.bf16.mxu1 %v1026_v0 }
  0x4b   : > { %806 = vmatpush3.bf16.msra.mxu0 %v909_v7 }
  0x4c   : > { %807 = vmatprep.subr.bf16.mxu0 %v1026_v0 }
  0x4f   : > { %808 = vmatpush3.bf16.msra.mxu0 %v910_v8 }
  0x50   : > { %809 = vmatprep.subr.bf16.mxu0 %v1026_v0 }
  0x53   : > { %810 = vmatpush3.bf16.msra.mxu0 %v911_v9 }
  0x54   : > { %811 = vmatprep.subr.bf16.mxu0 %v1026_v0 }
  0x57   : > { %812 = vmatpush3.bf16.msra.mxu0 %v912_v10 }
  0x58   : > { %841 = vmatprep.subr.bf16.mxu0 %v1026_v0 }
  0x5a   : > { %814 = vmatmul.mubr.bf16.vlgmr.msra.gmra.mrb[0].mxu0 %v246_v13 }
  0x5b   : > { %842 = vmatpush3.bf16.msra.mxu0 %v914_v14  ;;  %849 = vmatprep.mubr.msk.bf16.mxu0 %vm1027_vm0, %v1026_v0 }
  0x5c   : > { %843 = vmatprep.subr.bf16.mxu0 %v1026_v0 }
  0x5f   : > { %844 = vmatpush3.bf16.msra.mxu0 %v916_v15 }
  0x60   : > { %845 = vmatprep.subr.bf16.mxu0 %v1026_v0 }
  0x63   : > { %846 = vmatpush3.bf16.msra.mxu0 %v918_v17 }
  0x64   : > { %847 = vmatprep.subr.bf16.mxu0 %v1026_v0 }
  0x67   : > { %848 = vmatpush3.bf16.msra.mxu0 %v920_v19 }
 0x12d   : > { %v352_v21 = vpop.f32.mrb[0].mxu0 }
 0x12e   : > { %v353_v22 = vadd.f32 %v725_v20, %v352_v21  ;;  %v815_v23 = vpop.f32.mrb[1].mxu0 }
 0x12f   : > { %v355_v24 = vpop.f32.mrb[2].mxu0 }
 0x130   : > { %v359_v25 = vmul.f32 0.1, %v353_v22  ;;  %v356_v26 = vadd.f32 %v725_v20, %v355_v24  ;;  %v816_v27 = vpop.f32.mrb[3].mxu0 }
 0x132   : > { %v360_v28 = vmul.f32 0.1, %v356_v26  ;;  %v361_v29 = vmax.f32 %v353_v22, %v359_v25 }
 0x134   : > { %v362_v30 = vmax.f32 %v356_v26, %v360_v28 }
 0x136   : > { %v363_v32 = vpack.c.bf16 %v362_v30, %v361_v29 }
 0x138   : > { %826 = vmatmul.mubr.msk.bf16.vlgmr.msra.gmra.mrb[0].mxu1 %vm396_vm1, %v363_v32  ;;  %850 = vmatmul.mubr.msk.bf16.vlgmr.msra.gmra.mrb[4].mxu0 %vm396_vm1, %v363_v32 }
 0x139   : > { %830 = vmatpush3.bf16.msra.mxu1 %v921_v31  ;;  %837 = vmatprep.mubr.msk.bf16.mxu1 %vm1027_vm0, %v1026_v0 }
 0x13a   : > { %831 = vmatprep.subr.bf16.mxu1 %v1026_v0 }
 0x13d   : > { %832 = vmatpush3.bf16.msra.mxu1 %v922_v33 }
 0x13e   : > { %833 = vmatprep.subr.bf16.mxu1 %v1026_v0 }
 0x141   : > { %834 = vmatpush3.bf16.msra.mxu1 %v923_v34 }
 0x142   : > { %835 = vmatprep.subr.bf16.mxu1 %v1026_v0 }
 0x145   : > { %836 = vmatpush3.bf16.msra.mxu1 %v924_v35 }
 0x148   : > { %838 = vmatmul.mubr.msk.bf16.vlgmr.msra.gmra.mrb[4].mxu1 %vm396_vm1, %v363_v32 }
 0x20b   : > { %v434_v38 = vpop.f32.mrb[0].mxu1  ;;  %v594_v39 = vpop.f32.mrb[4].mxu0 }
 0x20c   : > { %v827_v40 = vpop.f32.mrb[1].mxu1  ;;  %v851_v41 = vpop.f32.mrb[5].mxu0  ;;  %v529_v44 = vrot.slane %v434_v38, 7 }
 0x20d   : > { %v437_v42 = vpop.f32.mrb[2].mxu1  ;;  %v597_v43 = vpop.f32.mrb[6].mxu0 }
 0x20e   : > { %v530_v45 = vrot.slane %v437_v42, 7  ;;  %v828_v46 = vpop.f32.mrb[3].mxu1  ;;  %v852_v47 = vpop.f32.mrb[7].mxu0 }
 0x210   : > { %v532_v48 = vsel %vm531_vm2, %v529_v44, %v530_v45  ;;  %v533_v49 = vsel %vm531_vm2, %v530_v45, %v529_v44 }
 0x211   : > { %v534_v50 = vsel %vm527_vm3, %v533_v49, 0.0  ;;  %v598_v51 = vadd.f32 %v597_v43, %v532_v48 }
 0x212   : > { %v595_v52 = vadd.f32 %v594_v39, %v534_v50 }
 0x21b   : > { %v517_v54 = vpop.f32.mrb[4].mxu1 }
 0x21c   : > { %v839_v55 = vpop.f32.mrb[5].mxu1  ;;  %v603_v57 = vrot.slane %v517_v54, 1 }
 0x21d   : > { %v520_v56 = vpop.f32.mrb[6].mxu1 }
 0x21e   : > { %v604_v58 = vrot.slane %v520_v56, 1  ;;  %v840_v59 = vpop.f32.mrb[7].mxu1 }
 0x220   : > { %v606_v60 = vsel %vm605_vm4, %v603_v57, %v604_v58  ;;  %v607_v61 = vsel %vm605_vm4, %v604_v58, %v603_v57 }
 0x221   : > { %v609_v63 = vsel %vm602_vm5, %v607_v61, 0.0  ;;  %v610_v0 = vadd.f32 %v606_v60, %v595_v52 }
 0x222   : > { %v611_v1 = vadd.f32 %v609_v63, %v598_v51 }
 0x223   : > { %v619_v2 = vadd.f32 %v765_v62, %v610_v0 }
 0x224   : > { %v620_v3 = vadd.f32 %v765_v62, %v611_v1 }
 0x225   : > { %v621_v4 = vmul.f32 0.1, %v619_v2 }
 0x226   : > { %v622_v5 = vmul.f32 0.1, %v620_v3 }
 0x227   : > { %v623_v6 = vmax.f32 %v619_v2, %v621_v4 }
 0x228   : > { %v624_v7 = vmax.f32 %v620_v3, %v622_v5 }
 0x229   : > { %v625_v8 = vadd.f32 %v623_v6, %v1222_v11 }
 0x22a   : > { %v626_v9 = vadd.f32 %v624_v7, %v1225_v12 }
 0x22b   : > { %627 = vst [vmem:[%s242_s16] sm:$0xff] %v625_v8 }
 0x22c   : > { %628 = vst [vmem:[%s242_s16 + $0x8] sm:$0xff] %v626_v9 }
 0x22d   : > { %968 = shalt.err (!%p965_p2)
}
 0x22e   : > { %s969_s17 = scalar_lea.hbm %s1289_s10, 256  ;;  %s973_s14 = scalar_lea.hbm %s1341_s5, 512 }
 0x22f   : > { %p970_p4 = scmp.ne.s32.totalorder %s1289_s10, %s969_s17  ;;  %p974_p9 = scmp.lt.u32.totalorder %s1289_s10, %s1341_s5 }
 0x230   : > { %p975_p1 = scmp.lt.u32.totalorder %s973_s14, %s969_s17  ;;  %p977_p6 = scmp.lt.u32.totalorder %s969_s17, %s1289_s10 }
 0x231   : > { %p971_p5 = pnand %p970_p4, %p1348_p11 }
 0x232   : > { %p976_p3 = por %p975_p1, %p974_p9 }
 0x233   : > { %p972_p7 = pneg %p971_p5 }
 0x234   : > { %p978_p12 = por %p977_p6, %p976_p3 }
 0x236   : > { %p979_p13 = pnand %p978_p12, %p972_p7 }
 0x238   : > { %982 = shalt.err (!%p979_p13)
}
 0x239   : > { %s1029_s16 = smov 128   ;;  %s1030_s7 = smov 8  }
 0x23a   : > { %855 = dma.vmem_to_hbm [thread:$0]  (%p1348_p11), %s1291_s8, 256, %s1289_s10, %s630_s22, %s1029_s16, %s1029_s16, %s1030_s7  }
 0x23b PF: > { %s658_s9 = sand.u32 1, %s1009_s18   ;;  %p1349_p8 = scmp.ne.s32.totalorder %s1346_s6, 0 }
 0x23c   : > { %p1350_p10 = scmp.ge.s32.totalorder %s1021_s21, 2  ;;  %s659_s25 = scalar_lea.sflag [#allocation4], %s658_s9 }
 0x23e   : > { %p862_p0 = pnand %p1350_p10, %p1349_p8 }
 0x240   : > { %1004 = dma.done.wait (!%p862_p0), %s659_s25, 256  }
 0x241   : > { %1006 = vsyncadd (!%p862_p0), %s659_s25, 4294967040  ;;  %p18_p2 = scmp.ge.s32.totalorder %s1086_s24, 4   ;;  %s1351_s18 = smov %s1013_s19 }
 0x242   : > { %s1352_s19 = smov %s1017_s20  ;;  %s1353_s20 = smov %s1098_s27 }
 0x243   : > { %s1354_s21 = smov %s1086_s24  ;;  %20 = sbr.rel (!%p18_p2) target bundleno = 5 (0x5), region = 87 }
 0x24a   :  { %664 = vsyncpa [#allocation3], 1 }
 0x24b   :  { %666 = vsyncpa [#allocation3 + $0x1], 1 }
 0x24c   :  { %667 = vsyncpa [#allocation4], 1 }
 0x24d   :  { %669 = vsyncpa [#allocation4 + $0x1], 1 }

</bundles_post_ra>
